<compile_context>
chip_gen: v6e
topology: v6e:2x2x1
jax: 0.10.0
libtpu: 0.0.40
codegen_flags: <defaults>
</compile_context>

<pallas_src>
import math

import jax
import jax.numpy as jnp
import numpy as np
from jax.experimental import pallas as pl
from jax.experimental.pallas import tpu as pltpu

SIGMA = 1.0

GRAY = (0.2989, 0.587, 0.114)
GX = ((1.0, 0.0, -1.0), (2.0, 0.0, -2.0), (1.0, 0.0, -1.0))
GY = ((1.0, 2.0, 1.0), (0.0, 0.0, 0.0), (-1.0, -2.0, -1.0))


def _gauss1(sigma):
    xs = (-1.0, 0.0, 1.0)
    k1 = [math.exp(-0.5 * (x / sigma) ** 2) for x in xs]
    s = sum(k1)
    return tuple(v / s for v in k1)


K1 = _gauss1(SIGMA)                                                       # separable taps (a, b, a)
GAUSS = tuple(tuple(K1[i] * K1[j] for j in range(3)) for i in range(3))   # reference only


# ----------------------------- in-kernel helpers -----------------------------
def _col_neighbors_reflect(x):
    """xm[:, c] = x[:, c-1], xp[:, c] = x[:, c+1] with reflect at the image columns."""
    w = x.shape[1]
    xm = jnp.concatenate([x[:, 1:2], x[:, : w - 1]], axis=1)
    xp = jnp.concatenate([x[:, 1:], x[:, w - 2 : w - 1]], axis=1)
    return xm, xp


def _shift_cols_zero(x, d):
    """out[:, c] = x[:, c+d] if 0 <= c+d < W else 0 (stands in for -inf: x >= 0)."""
    r, w = x.shape
    z = jnp.zeros((r, abs(d)), x.dtype)
    if d > 0:
        return jnp.concatenate([x[:, d:], z], axis=1)
    return jnp.concatenate([z, x[:, : w + d]], axis=1)


def _make_sobel_kernel(T, R):
    """T: output rows per tile; R: halo-block rows (dtype sublane granularity).

    The halo depth needed per side is 1 (blur) + 1 (sobel) + 2 (pool) = 4 rows;
    only the innermost 4 rows of each R-row halo block are consumed.  The
    row-reflect fixups patch exactly the 2 out-of-image rows per side that can
    reach a valid output; deeper halo rows only feed pool rows that the
    first/last-tile output fixup discards.  Blur/Sobel/pool sizes, the 4-row
    halo and the 2-row fixups are coupled - change them together.
    """
    assert R >= 4 and T >= 8 and T % 8 == 0
    a, b = K1[0], K1[1]

    def kernel(cur_ref, top_ref, bot_ref, out_ref):
        i = pl.program_id(0)
        first = i == 0
        last = i == pl.num_programs(0) - 1

        def to_gray(x):
            x = x.astype(jnp.float32)
            return GRAY[0] * x[0] + GRAY[1] * x[1] + GRAY[2] * x[2]

        g_cur = to_gray(cur_ref[...])   # (T, W)  global rows [i*T, i*T+T)
        g_top = to_gray(top_ref[...])   # (R, W)  global rows [i*T-R, i*T)      (clamped at top)
        g_bot = to_gray(bot_ref[...])   # (R, W)  global rows [i*T+T, i*T+T+R)  (clamped at bottom)

        # Row-reflect fixups on (1, W) slices, live only on the first/last tile.
        t2 = jnp.where(first, g_cur[2:3, :], g_top[R - 2:R - 1, :])    # row -2  <- row 2
        t1 = jnp.where(first, g_cur[1:2, :], g_top[R - 1:R, :])        # row -1  <- row 1
        b0 = jnp.where(last, g_cur[T - 2:T - 1, :], g_bot[0:1, :])     # row H   <- row H-2
        b1 = jnp.where(last, g_cur[T - 3:T - 2, :], g_bot[1:2, :])     # row H+1 <- row H-3

        # Extended gray plane: local row l  <->  global row i*T - 4 + l.
        g = jnp.concatenate(
            [g_top[R - 4:R - 2, :], t2, t1, g_cur, b0, b1, g_bot[2:4, :]], axis=0)   # (T+8, W)

        # --- 3x3 Gaussian blur, separable, reflect padding --------------------
        # Row reflect comes from the fixups + the Gaussian's row symmetry;
        # column reflect is exact (full width W is resident).
        bv = a * (g[0:T + 6, :] + g[2:T + 8, :]) + b * g[1:T + 7, :]    # (T+6, W) rows [i*T-3, i*T+T+3)
        bm, bp = _col_neighbors_reflect(bv)
        blur = a * (bm + bp) + b * bv                                    # (T+6, W)

        # --- 3x3 Sobel, separable, reflect padding; shared column taps --------
        cm, cp = _col_neighbors_reflect(blur)
        dh = cm - cp                    # horizontal [1, 0, -1]
        sh = cm + 2.0 * blur + cp       # horizontal [1, 2, 1]
        gx = dh[0:T + 4, :] + 2.0 * dh[1:T + 5, :] + dh[2:T + 6, :]      # (T+4, W)
        gy = sh[0:T + 4, :] - sh[2:T + 6, :]                             # (T+4, W)
        msq = gx * gx + gy * gy         # squared magnitude, rows [i*T-2, i*T+T+2)

        # --- 5x5 stride-1 max-pool on the SQUARED magnitude -------------------
        # sqrt is monotone, so it is deferred to the pooled result.  Columns
        # outside the image use zero-filled shifts (== -inf since msq >= 0).
        hm = msq
        for d in (1, 2, -1, -2):
            hm = jnp.maximum(hm, _shift_cols_zero(msq, d))               # (T+4, W)
        out = jnp.maximum(
            jnp.maximum(jnp.maximum(hm[0:T, :], hm[1:T + 1, :]),
                        jnp.maximum(hm[2:T + 2, :], hm[3:T + 3, :])),
            hm[4:T + 4, :])
        out_ref[...] = jnp.sqrt(out)

        # Pool rows outside the image (-inf in the reference) exist only on the
        # first/last tile and only reach output rows 0,1 / T-2,T-1: recompute
        # just those rows excluding hm rows 0,1 / T+2,T+3.
        @pl.when(first)
        def _():
            m = jnp.maximum(jnp.maximum(hm[2:3, :], hm[3:4, :]), hm[4:5, :])
            out_ref[0:1, :] = jnp.sqrt(m)
            out_ref[1:2, :] = jnp.sqrt(jnp.maximum(m, hm[5:6, :]))

        @pl.when(last)
        def _():
            m = jnp.maximum(jnp.maximum(hm[T + 1:T + 2, :], hm[T:T + 1, :]),
                            hm[T - 1:T, :])
            out_ref[T - 1:T, :] = jnp.sqrt(m)
            out_ref[T - 2:T - 1, :] = jnp.sqrt(jnp.maximum(m, hm[T - 2:T - 1, :]))

    return kernel


# --------------------------------- wrapper -----------------------------------
def _row_granularity(dtype):
    """Sublane tiling granularity for the image dtype (8 f32, 16 bf16, 32 u8)."""
    itemsize = jnp.dtype(dtype).itemsize
    return 8 if itemsize >= 4 else 8 * (4 // itemsize)


def _device_tuning():
    """Per-generation (cap_rows, plane_budget_bytes, vmem_limit_bytes, want_two_tiles)."""
    try:
        vmem_cap = int(getattr(pltpu.get_tpu_info(), "vmem_capacity_bytes", 0)) or None
    except Exception:
        vmem_cap = None
    if vmem_cap is not None and vmem_cap <= 96 * 1024 * 1024:
        # v7x-class: 64 MiB VMEM, 2 TensorCores -> smaller tiles, tight VMEM
        # budget, and >= 2 row tiles so dimension_semantics=("parallel",)
        # actually shards the grid across both cores.
        return 192, 3 * (1 << 19), min(48 * (1 << 20), (vmem_cap * 3) // 4), True
    if vmem_cap is None:
        # Unknown hardware: conservative defaults.
        return 256, 2 * (1 << 20), 32 * (1 << 20), False
    # v5e / v6e: 128 MiB VMEM, one TensorCore -> big tiles amortize the 8/T-row
    # halo refetch and the ~0.35 us per-grid-step overhead.
    return 512, 3 * (1 << 20), 64 * (1 << 20), False


def _pick_tile_h(H, W, gran, cap_rows, plane_budget_bytes, want_two_tiles):
    """Largest multiple-of-`gran` divisor of H within the row / VMEM-plane caps."""
    budget_rows = (plane_budget_bytes // (4 * max(W, 1))) // gran * gran
    cap = min(cap_rows, max(budget_rows, gran), H)
    if want_two_tiles and H >= 2 * gran:
        cap = min(cap, (H // 2) // gran * gran)       # guarantee >= 2 grid steps (2 TCs)
    cap = max(cap, gran)
    best = gran
    t = gran
    while t <= cap:
        if H % t == 0:
            best = t
        t += gran
    # TODO(synk): support non-divisor tile heights (grid = pl.cdiv(H, T) with a
    # masked last tile) so H = 8*prime shapes do not degrade to tiny tiles.
    return best


def sobel(img, *, tile_h=None):
    """img: (3, H, W) RGB (native dtype) -> (H, W) float32 edge map."""
    c, H, W = img.shape
    if c != 3:
        raise ValueError("expected a (3, H, W) RGB image")
    gran = _row_granularity(img.dtype)
    if H < gran or H % gran != 0 or W < 8:
        raise ValueError(
            f"requires H % {gran} == 0, H >= {gran} and W >= 8 for dtype {img.dtype}")
    # NOTE: W % 128 == 0 is the fast path (lane-dense, unmasked output stores);
    # other widths are correct but pay masked vst / partial-vreg column shifts.
    cap_rows, plane_budget, vmem_limit, two_tiles = _device_tuning()
    T = tile_h if tile_h is not None else _pick_tile_h(
        H, W, gran, cap_rows, plane_budget, two_tiles)
    if T % gran != 0 or H % T != 0:
        raise ValueError(f"tile_h must be a multiple of {gran} that divides H")
    R = gran            # halo block rows (only the innermost 4 are consumed)
    hb = T // R         # halo blocks per tile
    nb = H // R         # halo blocks in the image

    kernel = _make_sobel_kernel(T, R)
    in_bytes = jnp.dtype(img.dtype).itemsize
    cost = pl.CostEstimate(
        flops=int(45 * H * W),
        transcendentals=int(H * W),
        bytes_accessed=int(H * W * (3 * in_bytes + 4)),
    )
    return pl.pallas_call(
        kernel,
        out_shape=jax.ShapeDtypeStruct((H, W), jnp.float32),
        grid=(H // T,),
        in_specs=[
            # main row tile (stays in its native dtype; cast to f32 in-kernel)
            pl.BlockSpec((3, T, W), lambda i: (0, i, 0)),
            # R rows just above the tile (clamped to block 0 at the image top)
            pl.BlockSpec((3, R, W), lambda i: (0, jnp.maximum(i * hb - 1, 0), 0)),
            # R rows just below the tile (clamped to the last block at the bottom)
            pl.BlockSpec((3, R, W), lambda i: (0, jnp.minimum((i + 1) * hb, nb - 1), 0)),
        ],
        out_specs=pl.BlockSpec((T, W), lambda i: (i, 0)),
        compiler_params=pltpu.CompilerParams(
            dimension_semantics=("parallel",),
            vmem_limit_bytes=vmem_limit,
        ),
        cost_estimate=cost,
    )(img, img, img)


# --------------------------- pure-numpy reference ----------------------------
def _reference(img_np):
    """Numpy reference of the PyTorch forward (sigma fixed to SIGMA)."""
    img_np = np.asarray(img_np, np.float32)
    H, W = img_np.shape[1], img_np.shape[2]
    gray = GRAY[0] * img_np[0] + GRAY[1] * img_np[1] + GRAY[2] * img_np[2]

    def xcorr3(xp, k):
        oh, ow = xp.shape[0] - 2, xp.shape[1] - 2
        out = np.zeros((oh, ow), np.float32)
        for di in range(3):
            for dj in range(3):
                out += np.float32(k[di][dj]) * xp[di:di + oh, dj:dj + ow]
        return out

    blur = xcorr3(np.pad(gray, 1, mode="reflect"), GAUSS)
    bp = np.pad(blur, 1, mode="reflect")
    gx = xcorr3(bp, GX)
    gy = xcorr3(bp, GY)
    mag = np.sqrt(gx * gx + gy * gy)
    mp = np.pad(mag, 2, mode="constant", constant_values=-np.inf)
    out = np.zeros((H, W), np.float32)
    for i in range(H):
        for j in range(W):
            out[i, j] = mp[i:i + 5, j:j + 5].max()
    return out


if __name__ == "__main__":
    H, W = 32, 128
    key = jax.random.PRNGKey(0)
    img = jax.random.uniform(key, (3, H, W), dtype=jnp.float32)

    ref = _reference(np.asarray(img))

    # Multi-tile path: 4 row tiles -> exercises first / interior / last halos.
    out_tiled = jax.block_until_ready(sobel(img, tile_h=8))
    assert out_tiled.shape == (H, W), out_tiled.shape
    np.testing.assert_allclose(np.asarray(out_tiled), ref, rtol=1e-4, atol=1e-4)

    # Auto-picked tile size (generation-gated): boundary fixups on the same tile
    # or split across two tiles depending on the detected TPU.
    out_auto = jax.block_until_ready(sobel(img))
    np.testing.assert_allclose(np.asarray(out_auto), ref, rtol=1e-4, atol=1e-4)

    # Narrow-dtype input path (feedback: don't force f32 at the HBM boundary).
    img_bf16 = img.astype(jnp.bfloat16)
    ref_bf16 = _reference(np.asarray(img_bf16.astype(jnp.float32)))
    out_bf16 = jax.block_until_ready(sobel(img_bf16, tile_h=16))
    np.testing.assert_allclose(np.asarray(out_bf16), ref_bf16, rtol=1e-3, atol=1e-3)

    print("KERNEL_OK")
</pallas_src>

<mosaic_0001>
module attributes {stable_mosaic.version = 11 : i64} {
  func.func @kernel(%arg0: i32, %arg1: memref<3x8x128xf32, #tpu.memory_space<vmem>>, %arg2: memref<3x8x128xf32, #tpu.memory_space<vmem>>, %arg3: memref<3x8x128xf32, #tpu.memory_space<vmem>>, %arg4: memref<8x128xf32, #tpu.memory_space<vmem>>) attributes {dimension_semantics = [#tpu.dimension_semantics<parallel>], iteration_bounds = array<i64: 4>, scalar_prefetch = 0 : i64, scratch_operands = 0 : i64, tpu.core_type = #tpu.core_type<tc>, window_params = [{transform_indices = @transform_0, window_bounds = array<i64: 3, 8, 128>}, {transform_indices = @transform_1, window_bounds = array<i64: 3, 8, 128>}, {transform_indices = @transform_2, window_bounds = array<i64: 3, 8, 128>}, {transform_indices = @transform_3, window_bounds = array<i64: 8, 128>}]} {
    %c0_i32 = arith.constant 0 : i32
    %0 = arith.cmpi eq, %arg0, %c0_i32 : i32
    %c3_i32 = arith.constant 3 : i32
    %1 = arith.cmpi eq, %arg0, %c3_i32 : i32
    %c0 = arith.constant 0 : index
    %c0_0 = arith.constant 0 : index
    %c0_1 = arith.constant 0 : index
    %2 = vector.load %arg1[%c0, %c0_0, %c0_1] : memref<3x8x128xf32, #tpu.memory_space<vmem>>, vector<3x8x128xf32>
    %3 = vector.extract_strided_slice %2 {offsets = [0, 0, 0], sizes = [1, 8, 128], strides = [1, 1, 1]} : vector<3x8x128xf32> to vector<1x8x128xf32>
    %4 = vector.shape_cast %3 : vector<1x8x128xf32> to vector<8x128xf32>
    %cst = arith.constant 2.989000e-01 : f32
    %5 = vector.broadcast %cst : f32 to vector<8x128xf32>
    %6 = arith.mulf %5, %4 : vector<8x128xf32>
    %7 = vector.extract_strided_slice %2 {offsets = [1, 0, 0], sizes = [1, 8, 128], strides = [1, 1, 1]} : vector<3x8x128xf32> to vector<1x8x128xf32>
    %8 = vector.shape_cast %7 : vector<1x8x128xf32> to vector<8x128xf32>
    %cst_2 = arith.constant 5.870000e-01 : f32
    %9 = vector.broadcast %cst_2 : f32 to vector<8x128xf32>
    %10 = arith.mulf %9, %8 : vector<8x128xf32>
    %11 = arith.addf %6, %10 : vector<8x128xf32>
    %12 = vector.extract_strided_slice %2 {offsets = [2, 0, 0], sizes = [1, 8, 128], strides = [1, 1, 1]} : vector<3x8x128xf32> to vector<1x8x128xf32>
    %13 = vector.shape_cast %12 : vector<1x8x128xf32> to vector<8x128xf32>
    %cst_3 = arith.constant 1.140000e-01 : f32
    %14 = vector.broadcast %cst_3 : f32 to vector<8x128xf32>
    %15 = arith.mulf %14, %13 : vector<8x128xf32>
    %16 = arith.addf %11, %15 : vector<8x128xf32>
    %c0_4 = arith.constant 0 : index
    %c0_5 = arith.constant 0 : index
    %c0_6 = arith.constant 0 : index
    %17 = vector.load %arg2[%c0_4, %c0_5, %c0_6] : memref<3x8x128xf32, #tpu.memory_space<vmem>>, vector<3x8x128xf32>
    %18 = vector.extract_strided_slice %17 {offsets = [0, 0, 0], sizes = [1, 8, 128], strides = [1, 1, 1]} : vector<3x8x128xf32> to vector<1x8x128xf32>
    %19 = vector.shape_cast %18 : vector<1x8x128xf32> to vector<8x128xf32>
    %cst_7 = arith.constant 2.989000e-01 : f32
    %20 = vector.broadcast %cst_7 : f32 to vector<8x128xf32>
    %21 = arith.mulf %20, %19 : vector<8x128xf32>
    %22 = vector.extract_strided_slice %17 {offsets = [1, 0, 0], sizes = [1, 8, 128], strides = [1, 1, 1]} : vector<3x8x128xf32> to vector<1x8x128xf32>
    %23 = vector.shape_cast %22 : vector<1x8x128xf32> to vector<8x128xf32>
    %cst_8 = arith.constant 5.870000e-01 : f32
    %24 = vector.broadcast %cst_8 : f32 to vector<8x128xf32>
    %25 = arith.mulf %24, %23 : vector<8x128xf32>
    %26 = arith.addf %21, %25 : vector<8x128xf32>
    %27 = vector.extract_strided_slice %17 {offsets = [2, 0, 0], sizes = [1, 8, 128], strides = [1, 1, 1]} : vector<3x8x128xf32> to vector<1x8x128xf32>
    %28 = vector.shape_cast %27 : vector<1x8x128xf32> to vector<8x128xf32>
    %cst_9 = arith.constant 1.140000e-01 : f32
    %29 = vector.broadcast %cst_9 : f32 to vector<8x128xf32>
    %30 = arith.mulf %29, %28 : vector<8x128xf32>
    %31 = arith.addf %26, %30 : vector<8x128xf32>
    %c0_10 = arith.constant 0 : index
    %c0_11 = arith.constant 0 : index
    %c0_12 = arith.constant 0 : index
    %32 = vector.load %arg3[%c0_10, %c0_11, %c0_12] : memref<3x8x128xf32, #tpu.memory_space<vmem>>, vector<3x8x128xf32>
    %33 = vector.extract_strided_slice %32 {offsets = [0, 0, 0], sizes = [1, 8, 128], strides = [1, 1, 1]} : vector<3x8x128xf32> to vector<1x8x128xf32>
    %34 = vector.shape_cast %33 : vector<1x8x128xf32> to vector<8x128xf32>
    %cst_13 = arith.constant 2.989000e-01 : f32
    %35 = vector.broadcast %cst_13 : f32 to vector<8x128xf32>
    %36 = arith.mulf %35, %34 : vector<8x128xf32>
    %37 = vector.extract_strided_slice %32 {offsets = [1, 0, 0], sizes = [1, 8, 128], strides = [1, 1, 1]} : vector<3x8x128xf32> to vector<1x8x128xf32>
    %38 = vector.shape_cast %37 : vector<1x8x128xf32> to vector<8x128xf32>
    %cst_14 = arith.constant 5.870000e-01 : f32
    %39 = vector.broadcast %cst_14 : f32 to vector<8x128xf32>
    %40 = arith.mulf %39, %38 : vector<8x128xf32>
    %41 = arith.addf %36, %40 : vector<8x128xf32>
    %42 = vector.extract_strided_slice %32 {offsets = [2, 0, 0], sizes = [1, 8, 128], strides = [1, 1, 1]} : vector<3x8x128xf32> to vector<1x8x128xf32>
    %43 = vector.shape_cast %42 : vector<1x8x128xf32> to vector<8x128xf32>
    %cst_15 = arith.constant 1.140000e-01 : f32
    %44 = vector.broadcast %cst_15 : f32 to vector<8x128xf32>
    %45 = arith.mulf %44, %43 : vector<8x128xf32>
    %46 = arith.addf %41, %45 : vector<8x128xf32>
    %47 = vector.extract_strided_slice %16 {offsets = [2, 0], sizes = [1, 128], strides = [1, 1]} : vector<8x128xf32> to vector<1x128xf32>
    %48 = vector.extract_strided_slice %31 {offsets = [6, 0], sizes = [1, 128], strides = [1, 1]} : vector<8x128xf32> to vector<1x128xf32>
    %49 = arith.select %0, %47, %48 : vector<1x128xf32>
    %50 = vector.extract_strided_slice %16 {offsets = [1, 0], sizes = [1, 128], strides = [1, 1]} : vector<8x128xf32> to vector<1x128xf32>
    %51 = vector.extract_strided_slice %31 {offsets = [7, 0], sizes = [1, 128], strides = [1, 1]} : vector<8x128xf32> to vector<1x128xf32>
    %52 = arith.select %0, %50, %51 : vector<1x128xf32>
    %53 = vector.extract_strided_slice %16 {offsets = [6, 0], sizes = [1, 128], strides = [1, 1]} : vector<8x128xf32> to vector<1x128xf32>
    %54 = vector.extract_strided_slice %46 {offsets = [0, 0], sizes = [1, 128], strides = [1, 1]} : vector<8x128xf32> to vector<1x128xf32>
    %55 = arith.select %1, %53, %54 : vector<1x128xf32>
    %56 = vector.extract_strided_slice %16 {offsets = [5, 0], sizes = [1, 128], strides = [1, 1]} : vector<8x128xf32> to vector<1x128xf32>
    %57 = vector.extract_strided_slice %46 {offsets = [1, 0], sizes = [1, 128], strides = [1, 1]} : vector<8x128xf32> to vector<1x128xf32>
    %58 = arith.select %1, %56, %57 : vector<1x128xf32>
    %59 = vector.extract_strided_slice %31 {offsets = [4, 0], sizes = [2, 128], strides = [1, 1]} : vector<8x128xf32> to vector<2x128xf32>
    %60 = vector.extract_strided_slice %46 {offsets = [2, 0], sizes = [2, 128], strides = [1, 1]} : vector<8x128xf32> to vector<2x128xf32>
    %61 = tpu.concatenate %59, %49, %52, %16, %55, %58, %60 in 0 : vector<2x128xf32>, vector<1x128xf32>, vector<1x128xf32>, vector<8x128xf32>, vector<1x128xf32>, vector<1x128xf32>, vector<2x128xf32> -> vector<16x128xf32>
    %62 = vector.extract_strided_slice %61 {offsets = [0, 0], sizes = [14, 128], strides = [1, 1]} : vector<16x128xf32> to vector<14x128xf32>
    %63 = vector.extract_strided_slice %61 {offsets = [2, 0], sizes = [14, 128], strides = [1, 1]} : vector<16x128xf32> to vector<14x128xf32>
    %64 = arith.addf %62, %63 : vector<14x128xf32>
    %cst_16 = arith.constant 0.274068624 : f32
    %65 = vector.broadcast %cst_16 : f32 to vector<14x128xf32>
    %66 = arith.mulf %65, %64 : vector<14x128xf32>
    %67 = vector.extract_strided_slice %61 {offsets = [1, 0], sizes = [14, 128], strides = [1, 1]} : vector<16x128xf32> to vector<14x128xf32>
    %cst_17 = arith.constant 0.451862752 : f32
    %68 = vector.broadcast %cst_17 : f32 to vector<14x128xf32>
    %69 = arith.mulf %68, %67 : vector<14x128xf32>
    %70 = arith.addf %66, %69 : vector<14x128xf32>
    %71 = vector.extract_strided_slice %70 {offsets = [0, 1], sizes = [14, 1], strides = [1, 1]} : vector<14x128xf32> to vector<14x1xf32>
    %72 = vector.extract_strided_slice %70 {offsets = [0, 0], sizes = [14, 127], strides = [1, 1]} : vector<14x128xf32> to vector<14x127xf32>
    %73 = tpu.concatenate %71, %72 in 1 : vector<14x1xf32>, vector<14x127xf32> -> vector<14x128xf32>
    %74 = vector.extract_strided_slice %70 {offsets = [0, 1], sizes = [14, 127], strides = [1, 1]} : vector<14x128xf32> to vector<14x127xf32>
    %75 = vector.extract_strided_slice %70 {offsets = [0, 126], sizes = [14, 1], strides = [1, 1]} : vector<14x128xf32> to vector<14x1xf32>
    %76 = tpu.concatenate %74, %75 in 1 : vector<14x127xf32>, vector<14x1xf32> -> vector<14x128xf32>
    %77 = arith.addf %73, %76 : vector<14x128xf32>
    %cst_18 = arith.constant 0.274068624 : f32
    %78 = vector.broadcast %cst_18 : f32 to vector<14x128xf32>
    %79 = arith.mulf %78, %77 : vector<14x128xf32>
    %cst_19 = arith.constant 0.451862752 : f32
    %80 = vector.broadcast %cst_19 : f32 to vector<14x128xf32>
    %81 = arith.mulf %80, %70 : vector<14x128xf32>
    %82 = arith.addf %79, %81 : vector<14x128xf32>
    %83 = vector.extract_strided_slice %82 {offsets = [0, 1], sizes = [14, 1], strides = [1, 1]} : vector<14x128xf32> to vector<14x1xf32>
    %84 = vector.extract_strided_slice %82 {offsets = [0, 0], sizes = [14, 127], strides = [1, 1]} : vector<14x128xf32> to vector<14x127xf32>
    %85 = tpu.concatenate %83, %84 in 1 : vector<14x1xf32>, vector<14x127xf32> -> vector<14x128xf32>
    %86 = vector.extract_strided_slice %82 {offsets = [0, 1], sizes = [14, 127], strides = [1, 1]} : vector<14x128xf32> to vector<14x127xf32>
    %87 = vector.extract_strided_slice %82 {offsets = [0, 126], sizes = [14, 1], strides = [1, 1]} : vector<14x128xf32> to vector<14x1xf32>
    %88 = tpu.concatenate %86, %87 in 1 : vector<14x127xf32>, vector<14x1xf32> -> vector<14x128xf32>
    %89 = arith.subf %85, %88 : vector<14x128xf32>
    %cst_20 = arith.constant 2.000000e+00 : f32
    %90 = vector.broadcast %cst_20 : f32 to vector<14x128xf32>
    %91 = arith.mulf %90, %82 : vector<14x128xf32>
    %92 = arith.addf %85, %91 : vector<14x128xf32>
    %93 = arith.addf %92, %88 : vector<14x128xf32>
    %94 = vector.extract_strided_slice %89 {offsets = [0, 0], sizes = [12, 128], strides = [1, 1]} : vector<14x128xf32> to vector<12x128xf32>
    %95 = vector.extract_strided_slice %89 {offsets = [1, 0], sizes = [12, 128], strides = [1, 1]} : vector<14x128xf32> to vector<12x128xf32>
    %cst_21 = arith.constant 2.000000e+00 : f32
    %96 = vector.broadcast %cst_21 : f32 to vector<12x128xf32>
    %97 = arith.mulf %96, %95 : vector<12x128xf32>
    %98 = arith.addf %94, %97 : vector<12x128xf32>
    %99 = vector.extract_strided_slice %89 {offsets = [2, 0], sizes = [12, 128], strides = [1, 1]} : vector<14x128xf32> to vector<12x128xf32>
    %100 = arith.addf %98, %99 : vector<12x128xf32>
    %101 = vector.extract_strided_slice %93 {offsets = [0, 0], sizes = [12, 128], strides = [1, 1]} : vector<14x128xf32> to vector<12x128xf32>
    %102 = vector.extract_strided_slice %93 {offsets = [2, 0], sizes = [12, 128], strides = [1, 1]} : vector<14x128xf32> to vector<12x128xf32>
    %103 = arith.subf %101, %102 : vector<12x128xf32>
    %104 = arith.mulf %100, %100 : vector<12x128xf32>
    %105 = arith.mulf %103, %103 : vector<12x128xf32>
    %106 = arith.addf %104, %105 : vector<12x128xf32>
    %cst_22 = arith.constant 0.000000e+00 : f32
    %107 = vector.broadcast %cst_22 : f32 to vector<12x1xf32>
    %108 = vector.extract_strided_slice %106 {offsets = [0, 1], sizes = [12, 127], strides = [1, 1]} : vector<12x128xf32> to vector<12x127xf32>
    %109 = tpu.concatenate %108, %107 in 1 : vector<12x127xf32>, vector<12x1xf32> -> vector<12x128xf32>
    %110 = arith.maximumf %106, %109 : vector<12x128xf32>
    %cst_23 = arith.constant 0.000000e+00 : f32
    %111 = vector.broadcast %cst_23 : f32 to vector<12x2xf32>
    %112 = vector.extract_strided_slice %106 {offsets = [0, 2], sizes = [12, 126], strides = [1, 1]} : vector<12x128xf32> to vector<12x126xf32>
    %113 = tpu.concatenate %112, %111 in 1 : vector<12x126xf32>, vector<12x2xf32> -> vector<12x128xf32>
    %114 = arith.maximumf %110, %113 : vector<12x128xf32>
    %cst_24 = arith.constant 0.000000e+00 : f32
    %115 = vector.broadcast %cst_24 : f32 to vector<12x1xf32>
    %116 = vector.extract_strided_slice %106 {offsets = [0, 0], sizes = [12, 127], strides = [1, 1]} : vector<12x128xf32> to vector<12x127xf32>
    %117 = tpu.concatenate %115, %116 in 1 : vector<12x1xf32>, vector<12x127xf32> -> vector<12x128xf32>
    %118 = arith.maximumf %114, %117 : vector<12x128xf32>
    %cst_25 = arith.constant 0.000000e+00 : f32
    %119 = vector.broadcast %cst_25 : f32 to vector<12x2xf32>
    %120 = vector.extract_strided_slice %106 {offsets = [0, 0], sizes = [12, 126], strides = [1, 1]} : vector<12x128xf32> to vector<12x126xf32>
    %121 = tpu.concatenate %119, %120 in 1 : vector<12x2xf32>, vector<12x126xf32> -> vector<12x128xf32>
    %122 = arith.maximumf %118, %121 : vector<12x128xf32>
    %123 = vector.extract_strided_slice %122 {offsets = [0, 0], sizes = [8, 128], strides = [1, 1]} : vector<12x128xf32> to vector<8x128xf32>
    %124 = vector.extract_strided_slice %122 {offsets = [1, 0], sizes = [8, 128], strides = [1, 1]} : vector<12x128xf32> to vector<8x128xf32>
    %125 = arith.maximumf %123, %124 : vector<8x128xf32>
    %126 = vector.extract_strided_slice %122 {offsets = [2, 0], sizes = [8, 128], strides = [1, 1]} : vector<12x128xf32> to vector<8x128xf32>
    %127 = vector.extract_strided_slice %122 {offsets = [3, 0], sizes = [8, 128], strides = [1, 1]} : vector<12x128xf32> to vector<8x128xf32>
    %128 = arith.maximumf %126, %127 : vector<8x128xf32>
    %129 = arith.maximumf %125, %128 : vector<8x128xf32>
    %130 = vector.extract_strided_slice %122 {offsets = [4, 0], sizes = [8, 128], strides = [1, 1]} : vector<12x128xf32> to vector<8x128xf32>
    %131 = arith.maximumf %129, %130 : vector<8x128xf32>
    %132 = math.sqrt %131 : vector<8x128xf32>
    %c0_26 = arith.constant 0 : index
    %c0_27 = arith.constant 0 : index
    %133 = vector.load %arg4[%c0_26, %c0_27] : memref<8x128xf32, #tpu.memory_space<vmem>>, vector<8x128xf32>
    tpu.vector_store %arg4[%c0_26, %c0_27], %132 {strides = array<i32>} : memref<8x128xf32, #tpu.memory_space<vmem>>, vector<8x128xf32>,
    %134 = arith.extui %0 : i1 to i32
    %c0_i32_28 = arith.constant 0 : i32
    %135 = arith.cmpi ne, %134, %c0_i32_28 : i32
    scf.if %135 {
      %138 = vector.extract_strided_slice %122 {offsets = [2, 0], sizes = [1, 128], strides = [1, 1]} : vector<12x128xf32> to vector<1x128xf32>
      %139 = vector.extract_strided_slice %122 {offsets = [3, 0], sizes = [1, 128], strides = [1, 1]} : vector<12x128xf32> to vector<1x128xf32>
      %140 = arith.maximumf %138, %139 : vector<1x128xf32>
      %141 = vector.extract_strided_slice %122 {offsets = [4, 0], sizes = [1, 128], strides = [1, 1]} : vector<12x128xf32> to vector<1x128xf32>
      %142 = arith.maximumf %140, %141 : vector<1x128xf32>
      %143 = math.sqrt %142 : vector<1x128xf32>
      %c0_30 = arith.constant 0 : index
      %c0_31 = arith.constant 0 : index
      %144 = vector.load %arg4[%c0_30, %c0_31] : memref<8x128xf32, #tpu.memory_space<vmem>>, vector<1x128xf32>
      tpu.vector_store %arg4[%c0_30, %c0_31], %143 {strides = array<i32>} : memref<8x128xf32, #tpu.memory_space<vmem>>, vector<1x128xf32>,
      %145 = vector.extract_strided_slice %122 {offsets = [5, 0], sizes = [1, 128], strides = [1, 1]} : vector<12x128xf32> to vector<1x128xf32>
      %146 = arith.maximumf %142, %145 : vector<1x128xf32>
      %147 = math.sqrt %146 : vector<1x128xf32>
      %c1 = arith.constant 1 : index
      %c0_32 = arith.constant 0 : index
      %148 = vector.load %arg4[%c1, %c0_32] : memref<8x128xf32, #tpu.memory_space<vmem>>, vector<1x128xf32>
      tpu.vector_store %arg4[%c1, %c0_32], %147 {strides = array<i32>} : memref<8x128xf32, #tpu.memory_space<vmem>>, vector<1x128xf32>,
    } else {
    }
    %136 = arith.extui %1 : i1 to i32
    %c0_i32_29 = arith.constant 0 : i32
    %137 = arith.cmpi ne, %136, %c0_i32_29 : i32
    scf.if %137 {
      %138 = vector.extract_strided_slice %122 {offsets = [9, 0], sizes = [1, 128], strides = [1, 1]} : vector<12x128xf32> to vector<1x128xf32>
      %139 = vector.extract_strided_slice %122 {offsets = [8, 0], sizes = [1, 128], strides = [1, 1]} : vector<12x128xf32> to vector<1x128xf32>
      %140 = arith.maximumf %138, %139 : vector<1x128xf32>
      %141 = vector.extract_strided_slice %122 {offsets = [7, 0], sizes = [1, 128], strides = [1, 1]} : vector<12x128xf32> to vector<1x128xf32>
      %142 = arith.maximumf %140, %141 : vector<1x128xf32>
      %143 = math.sqrt %142 : vector<1x128xf32>
      %c7 = arith.constant 7 : index
      %c0_30 = arith.constant 0 : index
      %144 = vector.load %arg4[%c7, %c0_30] : memref<8x128xf32, #tpu.memory_space<vmem>>, vector<1x128xf32>
      tpu.vector_store %arg4[%c7, %c0_30], %143 {strides = array<i32>} : memref<8x128xf32, #tpu.memory_space<vmem>>, vector<1x128xf32>,
      %145 = vector.extract_strided_slice %122 {offsets = [6, 0], sizes = [1, 128], strides = [1, 1]} : vector<12x128xf32> to vector<1x128xf32>
      %146 = arith.maximumf %142, %145 : vector<1x128xf32>
      %147 = math.sqrt %146 : vector<1x128xf32>
      %c6 = arith.constant 6 : index
      %c0_31 = arith.constant 0 : index
      %148 = vector.load %arg4[%c6, %c0_31] : memref<8x128xf32, #tpu.memory_space<vmem>>, vector<1x128xf32>
      tpu.vector_store %arg4[%c6, %c0_31], %147 {strides = array<i32>} : memref<8x128xf32, #tpu.memory_space<vmem>>, vector<1x128xf32>,
    } else {
    }
    return
  }
  func.func @transform_0(%arg0: i32) -> (i32, i32, i32) {
    %c0_i32 = arith.constant 0 : i32
    %c0_i32_0 = arith.constant 0 : i32
    %c0_i32_1 = arith.constant 0 : i32
    return %c0_i32, %arg0, %c0_i32_0 : i32, i32, i32
  }
  func.func @transform_1(%arg0: i32) -> (i32, i32, i32) {
    %c1_i32 = arith.constant 1 : i32
    %0 = arith.muli %arg0, %c1_i32 : i32
    %c1_i32_0 = arith.constant 1 : i32
    %1 = arith.subi %0, %c1_i32_0 : i32
    %c0_i32 = arith.constant 0 : i32
    %2 = arith.maxsi %1, %c0_i32 : i32
    %c0_i32_1 = arith.constant 0 : i32
    %c0_i32_2 = arith.constant 0 : i32
    %c0_i32_3 = arith.constant 0 : i32
    return %c0_i32_1, %2, %c0_i32_2 : i32, i32, i32
  }
  func.func @transform_2(%arg0: i32) -> (i32, i32, i32) {
    %c1_i32 = arith.constant 1 : i32
    %0 = arith.addi %arg0, %c1_i32 : i32
    %c1_i32_0 = arith.constant 1 : i32
    %1 = arith.muli %0, %c1_i32_0 : i32
    %c3_i32 = arith.constant 3 : i32
    %2 = arith.minsi %1, %c3_i32 : i32
    %c0_i32 = arith.constant 0 : i32
    %c0_i32_1 = arith.constant 0 : i32
    %c0_i32_2 = arith.constant 0 : i32
    return %c0_i32, %2, %c0_i32_1 : i32, i32, i32
  }
  func.func @transform_3(%arg0: i32) -> (i32, i32) {
    %c0_i32 = arith.constant 0 : i32
    %c0_i32_0 = arith.constant 0 : i32
    return %arg0, %c0_i32 : i32, i32
  }
}

</mosaic_0001>

<bundles_post_ra>
// kernel: tpu_custom_call.1
= control target key start
LH: loop header
LB: loop body
LE: loop exit
PB: predicated region body
PF: predicated region fallthrough
CT: control target
= control target key end

     0   :  { %s1471_s0 = inlined_call_operand.hbm [shape: f32[3,32,128], index: 0, kind: input, shape index: {}]   ;;  %s1472_s1 = inlined_call_operand.hbm [shape: f32[3,32,128], index: 1, kind: input, shape index: {}]   ;;  %s1473_s2 = inlined_call_operand.hbm [shape: f32[3,32,128], index: 2, kind: input, shape index: {}]   ;;  %s1474_s3 = inlined_call_operand.hbm [shape: f32[32,128], index: 3, kind: output, shape index: {}]  }
   0x1   :  { %1494 = sst [smem:[#allocation20_spill]] %s1471_s0 }
   0x2   :  { %1495 = sst [smem:[#allocation21_spill]] %s1472_s1 }
   0x3   :  { %8 = vsyncpa [#allocation3], 0 }
   0x4   :  { %10 = vsyncpa [#allocation3 + $0x1], 0 }
   0x5   :  { %11 = vsyncpa [#allocation6], 0 }
   0x6   :  { %13 = vsyncpa [#allocation6 + $0x1], 0 }
   0x7   :  { %14 = vsyncpa [#allocation4], 0 }
   0x8   :  { %16 = vsyncpa [#allocation4 + $0x1], 0  ;;  %s1101_s12 = smov 0   ;;  %s1103_s13 = smov 0  }
   0x9   :  { %s1105_s14 = smov 0   ;;  %s1107_s15 = smov 0  }
   0xa   :  { %s1109_s16 = smov 0   ;;  %s1111_s17 = smov 0  }
   0xb   :  { %s1113_s18 = smov 0   ;;  %s1115_s19 = smov 0  }
   0xc   :  { %s1117_s20 = smov 0   ;;  %s1119_s21 = smov 0  }
   0xd LB: > { %1496 = sst [smem:[#allocation13_spill]] %s1052_s17  ;;  %s1150_s22 = sadd.s32 4294967295, %s1068_s21   ;;  %s1068_s21 = sphi %s1119_s21, %s1535_s21   ;;  %s1064_s20 = sphi %s1117_s20, %s1540_s20   ;;  %s1060_s19 = sphi %s1115_s19, %s1547_s19   ;;  %s1056_s18 = sphi %s1113_s18, %s1546_s18   ;;  %s1052_s17 = sphi %s1111_s17, %s1538_s17   ;;  %s1048_s16 = sphi %s1109_s16, %s1545_s16   ;;  %s1044_s15 = sphi %s1107_s15, %s1544_s15   ;;  %s1040_s14 = sphi %s1105_s14, %s1543_s14   ;;  %s1036_s13 = sphi %s1103_s13, %s1542_s13   ;;  %s1032_s12 = sphi %s1101_s12, %s1541_s12  }
   0xe   : > { %1497 = sst [smem:[#allocation14_spill]] %s1056_s18  ;;  %s1153_s23 = sadd.s32 1, %s1068_s21  }
   0xf   : > { %1498 = sst [smem:[#allocation15_spill]] %s1064_s20  ;;  %p1477_p0 = scmp.eq.s32.totalorder %s1068_s21, 0 }
  0x10   : > { %1499 = sst [smem:[#allocation16_spill]] %s1153_s23  ;;  %p1476_p1 = scmp.eq.s32.totalorder %s1150_s22, 0 }
  0x11   : > { %p53_p2 = scmp.gt.s32.totalorder %s1150_s22, 0  ;;  %s722_s24 = sadd.s32 4294967295, %s1153_s23 }
  0x12   : > { %p56_p3 = scmp.gt.s32.totalorder %s722_s24, 0  ;;  %s61_s25 = sadd.s32 1, %s1052_s17 }
  0x13   : > { %s54_s26 = scalar_select %p53_p2, %s1150_s22, 0 }
  0x14   : > { %s1549_s24 = smov (!%p56_p3, %s722_s24), 0  ;;  %p68_p4 = scmp.ne.s32.totalorder %s1052_s17, %s1048_s16 }
  0x15   : > { %p74_p5 = scmp.ne.s32.totalorder %s1048_s16, %s1044_s15  ;;  %s58_s27 = ssub.s32 %s54_s26, %s1549_s24 }
  0x16   : > { %p59_p7 = scmp.eq.s32.totalorder %s58_s27, 0  ;;  %p70_p8 = por %p68_p4, %p1477_p0 }
  0x17   : > { %p1169_p9 = por %p74_p5, %p1476_p1  ;;  %p1475_p10 = scmp.lt.s32.totalorder %s1068_s21, 4 }
  0x18   : > { %s1174_s29 = scalar_select %p59_p7, %s1052_s17, %s61_s25  }
  0x19   : > { %s1500_s28 = scalar_select %p1169_p9, 1, 0 }
  0x1a   : > { %1501 = sst [smem:[#allocation17_spill]] %s1174_s29  ;;  %s176_s30 = sand.u32 1, %s1068_s21  }
  0x1b   : > { %s178_s4 = sand.u32 1, %s1052_s17   ;;  %s727_s6 = sshll.u32 %s54_s26, 7 }
  0x1c   : > { %s738_s5 = smul.u32 24, %s178_s4  ;;  %p1181_p11 = pnand %p1475_p10, %p70_p8 }
  0x1d   : > { %s1503_s1 = sld [smem:[#allocation21_spill]]  ;;  %s1193_s24 = scalar_lea.sflag [#allocation6], %s176_s30 }
  0x1e   : > { %s180_s11 = scalar_lea.vmem [#allocation5], %s738_s5  ;;  %p866_p2 = pneg %p1181_p11 }
  0x1f   : > { %s189_s15 = sshll.u32 %s180_s11, 4  ;;  %s1190_s15 = int_to_ptr.vmem [resolvable:$true] %s189_s15 }
  0x23   : > { %s1188_s10 = scalar_lea.hbm %s1503_s1, %s727_s6  ;;  %s869_s4 = scalar_lea.hbm %s1503_s1, 1536 }
  0x24   : > { %s864_s25 = scalar_lea.hbm %s1188_s10, 384  ;;  %p870_p5 = scmp.lt.s32.totalorder %s1188_s10, %s1503_s1 }
  0x25   : > { %p865_p13 = scmp.ne.s32.totalorder %s1188_s10, %s864_s25  ;;  %p871_p7 = scmp.lt.s32.totalorder %s869_s4, %s864_s25 }
  0x27   : > { %p867_p3 = pnand %p866_p2, %p865_p13  ;;  %p872_p8 = por %p871_p7, %p870_p5 }
  0x29   : > { %p868_p4 = pneg %p867_p3 }
  0x2b   : > { %p873_p10 = pnand %p872_p8, %p868_p4 }
  0x2d   : > { %876 = shalt.err (!%p873_p10)
}
  0x2e   : > { %s877_s30 = scalar_lea.vmem %s1190_s15, 384  ;;  %s1070_s5 = smov [#allocation5]  }
  0x2f   : > { %p878_p6 = scmp.ne.s32.totalorder %s1190_s15, %s877_s30  ;;  %s882_s9 = sshll.u32 %s1070_s5, 4  ;;  %s883_s9 = int_to_ptr.vmem [resolvable:$false] %s882_s9 }
  0x30   : > { %s884_s11 = scalar_lea.vmem %s883_s9, 768  ;;  %p885_p3 = scmp.lt.s32.totalorder %s1190_s15, %s883_s9 }
  0x31   : > { %p880_p1 = pnand %p878_p6, %p866_p2  ;;  %p886_p0 = scmp.lt.s32.totalorder %s884_s11, %s877_s30 }
  0x33   : > { %p881_p13 = pneg %p880_p1  ;;  %p887_p12 = por %p886_p0, %p885_p3 }
  0x35   : > { %p888_p9 = pnand %p887_p12, %p881_p13 }
  0x37   : > { %891 = shalt.err (!%p888_p9)
}
  0x38   : > { %s1479_s25 = smov 512   ;;  %s1481_s26 = smov 128  }
  0x39   : > { %s1483_s27 = smov 8   ;;  %p220_p0 = scmp.lt.s32.totalorder %s1068_s21, 5 }
  0x3a   : > { %757 = dma.hbm_to_vmem [thread:$0]  (!%p1181_p11), %s1188_s10, 384, %s1190_s15, %s1193_s24, %s1479_s25, %s1481_s26, %s1483_s27  }
  0x3b   : > { %p1504_p1 = scmp.ge.s32.totalorder %s1068_s21, 1  ;;  %s720_s6 = sadd.s32 4294967294, %s1068_s21  }
  0x3c   : > { %s26_s8 = ssub.s32 %s1068_s21, %s1153_s23  ;;  %s29_s30 = sadd.s32 1, %s1064_s20 }
  0x3d   : > { %p1220_p6 = pnand %p1504_p1, %p220_p0  ;;  %p27_p9 = scmp.eq.s32.totalorder %s26_s8, 0 }
  0x3e   : > { %p36_p10 = scmp.ne.s32.totalorder %s1064_s20, %s1060_s19  ;;  %p42_p12 = scmp.ne.s32.totalorder %s1060_s19, %s1056_s18 }
  0x3f   : > { %s1505_s4 = scalar_select %p1220_p6, 1, 0 }
  0x40   : > { %s1233_s5 = scalar_select %p27_p9, %s1064_s20, %s29_s30  }
  0x41   : > { %p1507_p2 = scmp.eq.s32.totalorder %s1068_s21, 0  ;;  %p1508_p5 = scmp.eq.s32.totalorder %s1150_s22, 0 }
  0x42   : > { %1506 = sst [smem:[#allocation18_spill]] %s1233_s5  ;;  %p1510_p11 = scmp.eq.s32.totalorder %s1150_s22, 3 }
  0x43   : > { %p38_p4 = por %p1507_p2, %p36_p10  ;;  %p1239_p7 = por %p1508_p5, %p42_p12 }
  0x44   : > { %p1245_p8 = por %p1510_p11, %p36_p10  ;;  %p136_p13 = scmp.eq.s32.totalorder %s720_s6, 3 }
  0x45   : > { %s1509_s7 = scalar_select %p1239_p7, 1, 0 }
  0x46   : > { %s1511_s10 = scalar_select %p1245_p8, 1, 0 }
  0x47   : > { %s156_s15 = sand.u32 1, %s1064_s20   ;;  %s725_s9 = sshll.u32 %s1068_s21, 7 }
  0x48   : > { %p1251_p3 = por %p136_p13, %p42_p12  ;;  %s737_s8 = smul.u32 24, %s156_s15 }
  0x49   : > { %s1514_s0 = sld [smem:[#allocation20_spill]]  ;;  %p1515_p0 = scmp.lt.s32.totalorder %s1068_s21, 4 }
  0x4a   : > { %s1512_s11 = scalar_select %p1251_p3, 1, 0 }
  0x4b   : > { %p1262_p1 = pnand %p1515_p0, %p38_p4  ;;  %s160_s6 = scalar_lea.vmem [#allocation2], %s737_s8 }
  0x4c   : > { %1513 = sst [smem:[#allocation19_spill]] %s1512_s11  ;;  %s166_s1 = sshll.u32 %s160_s6, 4  ;;  %s1266_s1 = int_to_ptr.vmem [resolvable:$true] %s166_s1 }
  0x4d   : > { %s1268_s5 = scalar_lea.sflag [#allocation3], %s156_s15  ;;  %p894_p10 = pneg %p1262_p1 }
  0x4f   : > { %s1258_s26 = scalar_lea.hbm %s1514_s0, %s725_s9  ;;  %s897_s30 = scalar_lea.hbm %s1514_s0, 1536 }
  0x50   : > { %s892_s20 = scalar_lea.hbm %s1258_s26, 384  ;;  %p898_p4 = scmp.lt.s32.totalorder %s1258_s26, %s1514_s0 }
  0x51   : > { %p893_p9 = scmp.ne.s32.totalorder %s1258_s26, %s892_s20  ;;  %p899_p5 = scmp.lt.s32.totalorder %s897_s30, %s892_s20 }
  0x53   : > { %p895_p12 = pnand %p894_p10, %p893_p9  ;;  %p900_p11 = por %p899_p5, %p898_p4 }
  0x55   : > { %p896_p2 = pneg %p895_p12 }
  0x57   : > { %p901_p13 = pnand %p900_p11, %p896_p2 }
  0x59   : > { %904 = shalt.err (!%p901_p13)
}
  0x5a   : > { %s905_s15 = scalar_lea.vmem %s1266_s1, 384  ;;  %s1074_s8 = smov [#allocation2]  }
  0x5b   : > { %p906_p0 = scmp.ne.s32.totalorder %s1266_s1, %s905_s15  ;;  %s910_s6 = sshll.u32 %s1074_s8, 4  ;;  %s911_s6 = int_to_ptr.vmem [resolvable:$false] %s910_s6 }
  0x5c   : > { %s912_s25 = scalar_lea.vmem %s911_s6, 768  ;;  %p913_p12 = scmp.lt.s32.totalorder %s1266_s1, %s911_s6 }
  0x5d   : > { %p908_p3 = pnand %p906_p0, %p894_p10  ;;  %p914_p8 = scmp.lt.s32.totalorder %s912_s25, %s905_s15 }
  0x5f   : > { %p909_p9 = pneg %p908_p3  ;;  %p915_p7 = por %p914_p8, %p913_p12 }
  0x61   : > { %p916_p6 = pnand %p915_p7, %p909_p9 }
  0x63   : > { %919 = shalt.err (!%p916_p6)
}
  0x64   : > { %s1517_s17 = smov 8   ;;  %s1518_s20 = smov 128  }
  0x65   : > { %s1519_s29 = smov 512   ;;  %p85_p6 = scmp.lt.s32.totalorder %s1153_s23, 3 }
  0x66   : > { %754 = dma.hbm_to_vmem [thread:$0]  (!%p1262_p1), %s1258_s26, 384, %s1266_s1, %s1268_s5, %s1519_s29, %s1518_s20, %s1517_s17  }
  0x67   : > { %s87_s27 = sadd.s32 1, %s1153_s23  ;;  %s93_s9 = sadd.s32 1, %s1040_s14 }
  0x68   : > { %s86_s30 = scalar_select %p85_p6, %s1153_s23, 3 }
  0x69   : > { %p88_p7 = scmp.lt.s32.totalorder %s87_s27, 3  ;;  %p100_p8 = scmp.ne.s32.totalorder %s1040_s14, %s1036_s13 }
  0x6a   : > { %p106_p3 = scmp.ne.s32.totalorder %s1036_s13, %s1032_s12  ;;  %s201_s15 = sand.u32 1, %s1040_s14  }
  0x6b   : > { %s1551_s27 = smov (!%p88_p7, %s87_s27), 3  ;;  %p1520_p10 = scmp.eq.s32.totalorder %s1068_s21, 0 }
  0x6c   : > { %p1521_p4 = scmp.eq.s32.totalorder %s1150_s22, 0  ;;  %s90_s6 = ssub.s32 %s86_s30, %s1551_s27 }
  0x6d   : > { %p102_p2 = por %p100_p8, %p1520_p10  ;;  %s739_s1 = smul.u32 24, %s201_s15 }
  0x6e   : > { %p1305_p5 = por %p106_p3, %p1521_p4  ;;  %p91_p1 = scmp.eq.s32.totalorder %s90_s6, 0 }
  0x6f   : > { %s728_s26 = sshll.u32 %s86_s30, 7  ;;  %s203_s23 = scalar_lea.vmem [#allocation7], %s739_s1 }
  0x70   : > { %s1522_s8 = scalar_select %p1305_p5, 1, 0 }
  0x71   : > { %s1312_s0 = scalar_lea.hbm %s1473_s2, %s728_s26  ;;  %s212_s11 = sshll.u32 %s203_s23, 4  ;;  %s1323_s11 = int_to_ptr.vmem [resolvable:$true] %s212_s11 }
  0x72   : > { %s1315_s12 = scalar_select %p91_p1, %s1040_s14, %s93_s9  }
  0x73   : > { %p1523_p11 = scmp.lt.s32.totalorder %s1068_s21, 4  ;;  %s920_s27 = scalar_lea.hbm %s1312_s0, 384 }
  0x74   : > { %p921_p0 = scmp.ne.s32.totalorder %s1312_s0, %s920_s27  ;;  %s925_s9 = scalar_lea.hbm %s1473_s2, 1536 }
  0x75   : > { %p1319_p13 = pnand %p1523_p11, %p102_p2  ;;  %p926_p7 = scmp.lt.s32.totalorder %s1312_s0, %s1473_s2 }
  0x76   : > { %p927_p8 = scmp.lt.s32.totalorder %s925_s9, %s920_s27 }
  0x77   : > { %p922_p9 = pneg %p1319_p13 }
  0x78   : > { %p928_p3 = por %p927_p8, %p926_p7 }
  0x79   : > { %p923_p12 = pnand %p922_p9, %p921_p0 }
  0x7b   : > { %p924_p6 = pneg %p923_p12 }
  0x7d   : > { %p929_p10 = pnand %p928_p3, %p924_p6 }
  0x7f   : > { %932 = shalt.err (!%p929_p10)
}
  0x80   : > { %s933_s1 = scalar_lea.vmem %s1323_s11, 384  ;;  %s1075_s26 = smov [#allocation7]  }
  0x81   : > { %p934_p2 = scmp.ne.s32.totalorder %s1323_s11, %s933_s1  ;;  %s938_s5 = sshll.u32 %s1075_s26, 4  ;;  %s939_s5 = int_to_ptr.vmem [resolvable:$false] %s938_s5 }
  0x82   : > { %s940_s25 = scalar_lea.vmem %s939_s5, 768  ;;  %p941_p11 = scmp.lt.s32.totalorder %s1323_s11, %s939_s5 }
  0x83   : > { %p936_p4 = pnand %p934_p2, %p922_p9  ;;  %p942_p0 = scmp.lt.s32.totalorder %s940_s25, %s933_s1 }
  0x85   : > { %p937_p1 = pneg %p936_p4  ;;  %p943_p12 = por %p942_p0, %p941_p11 }
  0x87   : > { %p944_p5 = pnand %p943_p12, %p937_p1 }
  0x89   : > { %947 = shalt.err (!%p944_p5)
}
  0x8a   : > { %760 = dma.hbm_to_vmem [thread:$0]  (!%p1319_p13), %s1312_s0, 384, %s1323_s11, %s1193_s24, %s1519_s29, %s1518_s20, %s1517_s17  }
  0x8b   : > { %p1525_p9 = scmp.ne.s32.totalorder %s1505_s4, 0 }
  0x8c   : > { %s1350_s27 = sand.u32 (!%p1525_p9), 1, %s1060_s19   ;;  %p1526_p5 = scmp.ne.s32.totalorder (!%p1525_p9), %s1509_s7, 0 }
  0x8d   : > { %224 = sbr.rel (%p1525_p9) target bundleno = 690 (0x2b2), region = 32  ;;  %s227_s15 = scalar_lea.sflag (!%p1525_p9), [#allocation3], %s1350_s27 }
  0x8e   : > { %s740_s30 = smul.u32 (!%p1525_p9), 24, %s1350_s27 }
  0x90   : > { %s230_s9 = scalar_lea.vmem (!%p1525_p9), [#allocation2], %s740_s30 }
  0x92   : > { %1015 = dma.done.wait (%p1526_p5), %s227_s15, 384  }
  0x93   : > { %1017 = vsyncadd (%p1526_p5), %s227_s15, 4294966912  ;;  %s235_s0 = sand.u32 1, %s1150_s22   ;;  %s237_s18 = sand.u32 1, %s1048_s16  }
  0x94   : > { %s741_s24 = smul.u32 24, %s237_s18  ;;  %s236_s4 = scalar_lea.sflag [#allocation6], %s235_s0 }
  0x95   : > { %p1527_p13 = scmp.ne.s32.totalorder %s1500_s28, 0 }
  0x96   : > { %s239_s11 = scalar_lea.vmem [#allocation5], %s741_s24 }
  0x97   : > { %1019 = dma.done.wait (%p1527_p13), %s236_s4, 384  }
  0x98   : > { %1021 = vsyncadd (%p1527_p13), %s236_s4, 4294966912  ;;  %s246_s17 = sand.u32 1, %s1036_s13   ;;  %p1528_p6 = scmp.ne.s32.totalorder %s1522_s8, 0 }
  0x99   : > { %s742_s20 = smul.u32 24, %s246_s17 }
  0x9b   : > { %s248_s29 = scalar_lea.vmem [#allocation7], %s742_s20 }
  0x9c   : > { %1023 = dma.done.wait (%p1528_p6), %s236_s4, 384  }
  0x9d   : > { %1025 = vsyncadd (%p1528_p6), %s236_s4, 4294966912  ;;  %v289_v0 = vld [vmem:[%s230_s9] sm:$0xff]  ;;  %v290_v1 = vld [vmem:[%s230_s9 + $0x8] sm:$0xff]  ;;  %p1529_p7 = scmp.eq.s32.totalorder %s1150_s22, 0  ;;  %p1530_p8 = scmp.eq.s32.totalorder %s1150_s22, 3  ;;  %vm342_vm1 = vcmask 1041408  }
  0x9e   : > { %v291_v2 = vld [vmem:[%s230_s9 + $0x10] sm:$0xff]  ;;  %v292_v3 = vmul.f32 0.2989, %v289_v0  ;;  %v293_v4 = vmul.f32 0.587, %v290_v1  ;;  %v298_v7 = vld [vmem:[%s239_s11 + $0x8] sm:$0xff] }
  0x9f   : > { %s313_s7 = scalar_select %p1529_p7, 1, 0  ;;  %v295_v5 = vmul.f32 0.114, %v291_v2  ;;  %v297_v6 = vld [vmem:[%s239_s11] sm:$0xff]  ;;  %v299_v8 = vld [vmem:[%s239_s11 + $0x10] sm:$0xff] }
  0xa0   : > { %s323_s28 = scalar_select %p1530_p8, 1, 0  ;;  %v294_v9 = vadd.f32 %v293_v4, %v292_v3  ;;  %v300_v10 = vmul.f32 0.2989, %v297_v6  ;;  %v301_v11 = vmul.f32 0.587, %v298_v7 }
  0xa1   : > { %v303_v12 = vmul.f32 0.114, %v299_v8  ;;  %v305_v13 = vld [vmem:[%s248_s29] sm:$0xff]  ;;  %v306_v14 = vld [vmem:[%s248_s29 + $0x8] sm:$0xff]  ;;  %v307_v15 = vld [vmem:[%s248_s29 + $0x10] sm:$0xff]  ;;  %v314_v19 = vstv %s313_s7  ;;  %vm344_vm3 = vcmask 1042432  }
  0xa2   : > { %v302_v16 = vadd.f32 %v301_v11, %v300_v10  ;;  %v308_v17 = vmul.f32 0.2989, %v305_v13  ;;  %v309_v18 = vmul.f32 0.587, %v306_v14  ;;  %v311_v20 = vmul.f32 0.114, %v307_v15 }
  0xa3   : > { %v296_v21 = vadd.f32 %v295_v5, %v294_v9  ;;  %v324_v24 = vstv %s323_s28  ;;  %vm315_vm0 = vcmp.eq.s32.totalorder %v314_v19, 1  ;;  %vm346_vm4 = vcmask 1043456   ;;  %s1076_s8 = smov 1   ;;  %s1077_s6 = smov 127  }
  0xa4   : > { %v304_v22 = vadd.f32 %v303_v12, %v302_v16  ;;  %v310_v23 = vadd.f32 %v309_v18, %v308_v17  ;;  %vm325_vm2 = vcmp.eq.s32.totalorder %v324_v24, 1  ;;  %vm349_vm5 = vcmask 1044480   ;;  %s1078_s23 = smov 126   ;;  %s1079_s1 = smov 2  }
  0xa5   : > { %v337_v33 = vrot.slane %v296_v21, 4  ;;  %vm351_vm6 = vcmask 1045504   ;;  %vm368_vm7 = vcmask 1046528   ;;  %vm390_vm8 = vcmask 7168   ;;  %s730_s26 = sshll.u32 %s1350_s27, 3  ;;  %p731_p3 = scmp.ne.s32.totalorder %s1150_s22, 0 }
  0xa6   : > { %v312_v25 = vadd.f32 %v311_v20, %v310_v23  ;;  %v317_v26 = vrot.slane %v304_v22, 4  ;;  %v320_v27 = vrot.slane %v304_v22, 6  ;;  %vm393_vm9 = vcmask 1039360   ;;  %s1409_s5 = scalar_lea.vmem [#allocation8], %s730_s26 }
  0xa7   : > { %vm483_vm10 = vcmask 1031168   ;;  %vm504_vm11 = vcmask 15360  }
  0xa8   : > { %v319_v28 = vsel %vm315_vm0, %v296_v21, %v317_v26  ;;  %v322_v29 = vsel %vm315_vm0, %v296_v21, %v320_v27  ;;  %v327_v30 = vrot.slane %v312_v25, 2  ;;  %v330_v31 = vrot.slane %v312_v25, 4 }
  0xa9   : > { %v334_v32 = vrot.slane %v322_v29, 6  ;;  %v343_v34 = vsel %vm342_vm1, %v317_v26, %v319_v28 }
  0xaa   : > { %v329_v35 = vsel %vm325_vm2, %v296_v21, %v327_v30  ;;  %v332_v36 = vsel %vm325_vm2, %v296_v21, %v330_v31 }
  0xab   : > { %v340_v37 = vrot.slane %v329_v35, 2  ;;  %v345_v38 = vsel %vm344_vm3, %v343_v34, %v334_v32 }
  0xac   : > { %v347_v39 = vsel %vm346_vm4, %v345_v38, %v337_v33 }
  0xad   : > { %v348_v40 = vsel %vm346_vm4, %v337_v33, %v340_v37  ;;  %v364_v41 = vmul.f32 0.45186275, %v347_v39  ;;  %v355_v43 = vrot.slane %v347_v39, 2 }
  0xae   : > { %v350_v42 = vsel %vm349_vm5, %v348_v40, %v332_v36 }
  0xaf   : > { %v352_v44 = vsel %vm351_vm6, %v350_v42, %v330_v31  ;;  %v369_v47 = vrot.slane %v364_v41, 1 }
  0xb0   : > { %v356_v45 = vrot.slane %v352_v44, 2  ;;  %v365_v46 = vmul.f32 0.45186275, %v352_v44 }
  0xb2   : > { %v357_v48 = vsel %vm351_vm6, %v355_v43, %v356_v45  ;;  %v370_v49 = vrot.slane %v365_v46, 1  ;;  %v361_v50 = vadd.f32 %v356_v45, %v352_v44 }
  0xb3   : > { %v360_v51 = vadd.f32 %v357_v48, %v347_v39 }
  0xb4   : > { %v371_v52 = vsel %vm368_vm7, %v369_v47, %v370_v49  ;;  %v363_v54 = vmul.f32 0.27406862, %v361_v50 }
  0xb5   : > { %v362_v53 = vmul.f32 0.27406862, %v360_v51 }
  0xb6   : > { %v375_v56 = vadd.f32 %v370_v49, %v363_v54 }
  0xb7   : > { %v374_v55 = vadd.f32 %v371_v52, %v362_v53 }
  0xb8   : > { %v401_v6 = vmul.f32 0.45186275, %v375_v56 }
  0xb9   : > { %384 = vrot.lane.b32.xlu1 %v374_v55, %s1076_s8  ;;  %378 = vrot.lane.b32.xlu0 %v374_v55, %s1077_s6  ;;  %v400_v62 = vmul.f32 0.45186275, %v374_v55 }
  0xbd   : > { %386 = vrot.lane.b32.xlu1 %v375_v56, %s1076_s8  ;;  %380 = vrot.lane.b32.xlu0 %v375_v56, %s1077_s6 }
 0x12b   : > { %v385_v57 = vpop.permute.xlu1 %384  ;;  %v379_v58 = vpop.permute.xlu0 %378 }
 0x12c   : > { %v391_v59 = vsel %vm390_vm8, %v379_v58, %v385_v57  ;;  %v394_v60 = vsel %vm393_vm9, %v379_v58, %v385_v57 }
 0x12d   : > { %v396_v61 = vadd.f32 %v394_v60, %v391_v59 }
 0x12f   : > { %v398_v63 = vmul.f32 0.27406862, %v396_v61  ;;  %v387_v0 = vpop.permute.xlu1 %386  ;;  %v381_v1 = vpop.permute.xlu0 %380 }
 0x130   : > { %v392_v2 = vsel %vm390_vm8, %v381_v1, %v387_v0  ;;  %v395_v3 = vsel %vm393_vm9, %v381_v1, %v387_v0 }
 0x131   : > { %v397_v4 = vadd.f32 %v395_v3, %v392_v2  ;;  %v402_v5 = vadd.f32 %v400_v62, %v398_v63 }
 0x133   : > { %v399_v7 = vmul.f32 0.27406862, %v397_v4  ;;  %406 = vrot.lane.b32.xlu0 %v402_v5, %s1077_s6  ;;  %v424_v12 = vmul.f32 2.0, %v402_v5 }
 0x135   : > { %v403_v8 = vadd.f32 %v401_v6, %v399_v7 }
 0x137   : > { %408 = vrot.lane.b32.xlu1 %v403_v8, %s1077_s6  ;;  %412 = vrot.lane.b32.xlu0 %v402_v5, %s1076_s8  ;;  %v425_v18 = vmul.f32 2.0, %v403_v8 }
 0x13b   : > { %414 = vrot.lane.b32.xlu1 %v403_v8, %s1076_s8 }
 0x1a5   : > { %v407_v9 = vpop.permute.xlu0 %406 }
 0x1a9   : > { %v409_v10 = vpop.permute.xlu1 %408  ;;  %v413_v11 = vpop.permute.xlu0 %412 }
 0x1aa   : > { %v418_v13 = vsel %vm390_vm8, %v407_v9, %v413_v11  ;;  %v420_v14 = vsel %vm393_vm9, %v407_v9, %v413_v11 }
 0x1ab   : > { %v422_v15 = vsub.f32 %v418_v13, %v420_v14  ;;  %v426_v16 = vadd.f32 %v424_v12, %v418_v13 }
 0x1ad   : > { %v415_v17 = vpop.permute.xlu1 %414  ;;  %v430_v19 = vmul.f32 2.0, %v422_v15  ;;  %v428_v22 = vadd.f32 %v426_v16, %v420_v14  ;;  %v443_v32 = vrot.slane %v422_v15, 2 }
 0x1ae   : > { %v419_v20 = vsel %vm390_vm8, %v409_v10, %v415_v17  ;;  %v421_v21 = vsel %vm393_vm9, %v409_v10, %v415_v17 }
 0x1af   : > { %v423_v23 = vsub.f32 %v419_v20, %v421_v21  ;;  %v427_v24 = vadd.f32 %v425_v18, %v419_v20  ;;  %v434_v27 = vrot.slane %v430_v19, 1  ;;  %v452_v28 = vrot.slane %v428_v22, 2 }
 0x1b1   : > { %v429_v25 = vadd.f32 %v427_v24, %v421_v21  ;;  %v431_v26 = vmul.f32 2.0, %v423_v23  ;;  %v444_v30 = vrot.slane %v423_v23, 2 }
 0x1b3   : > { %v435_v29 = vrot.slane %v431_v26, 1  ;;  %v453_v31 = vrot.slane %v429_v25, 2  ;;  %v445_v39 = vsel %vm351_vm6, %v443_v32, %v444_v30 }
 0x1b5   : > { %v436_v33 = vsel %vm368_vm7, %v434_v27, %v435_v29  ;;  %v440_v34 = vadd.f32 %v435_v29, %v423_v23  ;;  %v454_v35 = vsel %vm351_vm6, %v452_v28, %v453_v31  ;;  %v458_v36 = vsub.f32 %v429_v25, %v453_v31 }
 0x1b6   : > { %v439_v37 = vadd.f32 %v436_v33, %v422_v15  ;;  %v457_v38 = vsub.f32 %v428_v22, %v454_v35 }
 0x1b7   : > { %v449_v40 = vadd.f32 %v444_v30, %v440_v34  ;;  %v462_v43 = vmul.f32 %v458_v36, %v458_v36 }
 0x1b8   : > { %v448_v41 = vadd.f32 %v445_v39, %v439_v37  ;;  %v461_v45 = vmul.f32 %v457_v38, %v457_v38 }
 0x1b9   : > { %v460_v42 = vmul.f32 %v449_v40, %v449_v40 }
 0x1ba   : > { %v459_v44 = vmul.f32 %v448_v41, %v448_v41 }
 0x1bb   : > { %v464_v46 = vadd.f32 %v462_v43, %v460_v42 }
 0x1bc   : > { %v463_v47 = vadd.f32 %v461_v45, %v459_v44 }
 0x1bd   : > { %469 = vrot.lane.b32.xlu1 %v464_v46, %s1077_s6 }
 0x1be   : > { %467 = vrot.lane.b32.xlu0 %v463_v47, %s1077_s6 }
 0x1c1   : > { %479 = vrot.lane.b32.xlu1 %v464_v46, %s1078_s23 }
 0x1c2   : > { %477 = vrot.lane.b32.xlu0 %v463_v47, %s1078_s23 }
 0x1c5   : > { %490 = vrot.lane.b32.xlu1 %v464_v46, %s1076_s8 }
 0x1c6   : > { %488 = vrot.lane.b32.xlu0 %v463_v47, %s1076_s8 }
 0x1c9   : > { %500 = vrot.lane.b32.xlu1 %v464_v46, %s1079_s1 }
 0x1ca   : > { %498 = vrot.lane.b32.xlu0 %v463_v47, %s1079_s1 }
 0x22f   : > { %v470_v48 = vpop.permute.xlu1 %469 }
 0x230   : > { %v468_v49 = vpop.permute.xlu0 %467  ;;  %v474_v51 = vsel %vm393_vm9, %v470_v48, 0.0 }
 0x231   : > { %v473_v53 = vsel %vm393_vm9, %v468_v49, 0.0  ;;  %v476_v55 = vmax.f32 %v464_v46, %v474_v51 }
 0x232   : > { %v475_v58 = vmax.f32 %v463_v47, %v473_v53 }
 0x233   : > { %v480_v50 = vpop.permute.xlu1 %479 }
 0x234   : > { %v478_v52 = vpop.permute.xlu0 %477  ;;  %v485_v54 = vsel %vm483_vm10, %v480_v50, 0.0 }
 0x235   : > { %v484_v56 = vsel %vm483_vm10, %v478_v52, 0.0  ;;  %v487_v61 = vmax.f32 %v476_v55, %v485_v54 }
 0x236   : > { %v486_v63 = vmax.f32 %v475_v58, %v484_v56 }
 0x237   : > { %v491_v57 = vpop.permute.xlu1 %490 }
 0x238   : > { %v495_v59 = vsel %vm390_vm8, 0.0, %v491_v57  ;;  %v489_v60 = vpop.permute.xlu0 %488 }
 0x239   : > { %v494_v62 = vsel %vm390_vm8, 0.0, %v489_v60  ;;  %v497_v0 = vmax.f32 %v487_v61, %v495_v59 }
 0x23a   : > { %v496_v2 = vmax.f32 %v486_v63, %v494_v62 }
 0x23b   : > { %v501_v1 = vpop.permute.xlu1 %500 }
 0x23c   : > { %v506_v3 = vsel %vm504_vm11, 0.0, %v501_v1  ;;  %v499_v4 = vpop.permute.xlu0 %498 }
 0x23d   : > { %v508_v5 = vmax.f32 %v497_v0, %v506_v3  ;;  %v505_v6 = vsel %vm504_vm11, 0.0, %v499_v4 }
 0x23e   : > { %v507_v7 = vmax.f32 %v496_v2, %v505_v6 }
 0x23f   : > { %v512_v8 = vrot.slane %v508_v5, 1  ;;  %v526_v14 = vrot.slane %v508_v5, 4 }
 0x240   : > { %v511_v9 = vrot.slane %v507_v7, 1  ;;  %v525_v16 = vrot.slane %v507_v7, 4 }
 0x241   : > { %v517_v10 = vmax.f32 %v508_v5, %v512_v8 }
 0x242   : > { %v513_v11 = vsel %vm368_vm7, %v511_v9, %v512_v8  ;;  %v527_v19 = vsel %vm346_vm4, %v525_v16, %v526_v14 }
 0x243   : > { %v515_v12 = vmax.f32 %v507_v7, %v513_v11  ;;  %v521_v13 = vrot.slane %v517_v10, 2 }
 0x245   : > { %v520_v15 = vrot.slane %v515_v12, 2 }
 0x247   : > { %v522_v17 = vsel %vm351_vm6, %v520_v15, %v521_v13 }
 0x248   : > { %v524_v18 = vmax.f32 %v515_v12, %v522_v17 }
 0x24a   : > { %v529_v20 = vmax.f32 %v524_v18, %v527_v19 }
 0x24c   : > { %854 = vrsqrt.f32 %v529_v20  ;;  %vm532_vm12 = vcmp.eq.f32.partialorder %v529_v20, inf  ;;  %v535_v23 = vand.u32 2147483648, %v529_v20  ;;  %vm534_vm13 = vcmp.eq.f32.partialorder %v529_v20, 0.0 }
 0x259   : > { %v855_v21 = vpop.eup %854 }
 0x25a   : > { %v531_v22 = vmul.f32 %v855_v21, %v529_v20  ;;  %540 = sbr.rel (%p731_p3) target bundleno = 632 (0x278), region = 48 }
 0x25c   : > { %v533_v24 = vsel %vm532_vm12, %v529_v20, %v531_v22 }
 0x25d   : > { %v536_v25 = vsel %vm534_vm13, %v535_v23, %v533_v24 }
 0x25e   : > { %537 = vst [vmem:[%s1409_s5] sm:$0xff] %v536_v25 }
 0x25f   : > { %v542_v26 = vmax.f32 %v507_v7, %v511_v9  ;;  %v543_v27 = vrot.slane %v507_v7, 2  ;;  %v554_v28 = vrot.slane %v507_v7, 3 }
 0x261   : > { %v545_v29 = vmax.f32 %v542_v26, %v543_v27 }
 0x263   : > { %856 = vrsqrt.f32 %v545_v29  ;;  %v556_v30 = vmax.f32 %v545_v29, %v554_v28  ;;  %vm548_vm14 = vcmp.eq.f32.partialorder %v545_v29, inf  ;;  %v551_v32 = vand.u32 2147483648, %v545_v29 }
 0x264   : > { %vm550_vm15 = vcmp.eq.f32.partialorder %v545_v29, 0.0 }
 0x265   : > { %858 = vrsqrt.f32 %v556_v30  ;;  %vm559_vm0 = vcmp.eq.f32.partialorder %v556_v30, inf  ;;  %v562_v36 = vand.u32 2147483648, %v556_v30  ;;  %vm561_vm1 = vcmp.eq.f32.partialorder %v556_v30, 0.0 }
 0x270   : > { %v857_v31 = vpop.eup %856 }
 0x271   : > { %v547_v33 = vmul.f32 %v857_v31, %v545_v29 }
 0x272   : > { %v859_v34 = vpop.eup %858 }
 0x273   : > { %v549_v35 = vsel %vm548_vm14, %v545_v29, %v547_v33  ;;  %v558_v38 = vmul.f32 %v859_v34, %v556_v30 }
 0x274   : > { %v552_v37 = vsel %vm550_vm15, %v551_v32, %v549_v35 }
 0x275   : > { %553 = vst [vmem:[%s1409_s5 - $0x2] sm:$0x4] %v552_v37  ;;  %v560_v39 = vsel %vm559_vm0, %v556_v30, %v558_v38 }
 0x276   : > { %v563_v40 = vsel %vm561_vm1, %v562_v36, %v560_v39 }
 0x277   : > { %564 = vst [vmem:[%s1409_s5 - $0x1] sm:$0x4] %v563_v40 }
 0x278 PF: > { %p732_p10 = scmp.ne.s32.totalorder %s1150_s22, 3 }
 0x27a   : > { %567 = sbr.rel (%p732_p10) target bundleno = 666 (0x29a), region = 52 }
 0x27f   : > { %v568_v41 = vrot.slane %v508_v5, 7  ;;  %v571_v42 = vrot.slane %v507_v7, 6  ;;  %v582_v44 = vrot.slane %v507_v7, 5 }
 0x281   : > { %v570_v43 = vmax.f32 %v508_v5, %v568_v41 }
 0x283   : > { %v573_v45 = vmax.f32 %v570_v43, %v571_v42 }
 0x285   : > { %860 = vrsqrt.f32 %v573_v45  ;;  %v584_v46 = vmax.f32 %v573_v45, %v582_v44  ;;  %vm576_vm2 = vcmp.eq.f32.partialorder %v573_v45, inf  ;;  %v579_v48 = vand.u32 2147483648, %v573_v45 }
 0x286   : > { %vm578_vm3 = vcmp.eq.f32.partialorder %v573_v45, 0.0 }
 0x287   : > { %862 = vrsqrt.f32 %v584_v46  ;;  %vm587_vm4 = vcmp.eq.f32.partialorder %v584_v46, inf  ;;  %v590_v52 = vand.u32 2147483648, %v584_v46  ;;  %vm589_vm5 = vcmp.eq.f32.partialorder %v584_v46, 0.0 }
 0x292   : > { %v861_v47 = vpop.eup %860 }
 0x293   : > { %v575_v49 = vmul.f32 %v861_v47, %v573_v45 }
 0x294   : > { %v863_v50 = vpop.eup %862 }
 0x295   : > { %v577_v51 = vsel %vm576_vm2, %v573_v45, %v575_v49  ;;  %v586_v54 = vmul.f32 %v863_v50, %v584_v46 }
 0x296   : > { %v580_v53 = vsel %vm578_vm3, %v579_v48, %v577_v51 }
 0x297   : > { %581 = vst [vmem:[%s1409_s5 + $0x6] sm:$0x2] %v580_v53  ;;  %v588_v55 = vsel %vm587_vm4, %v584_v46, %v586_v54 }
 0x298   : > { %v591_v56 = vsel %vm589_vm5, %v590_v52, %v588_v55 }
 0x299   : > { %592 = vst [vmem:[%s1409_s5 + $0x5] sm:$0x2] %v591_v56 }
 0x29a PF: > { %s734_s25 = sshll.u32 %s1150_s22, 7  ;;  %s607_s0 = sshll.u32 %s1409_s5, 4  ;;  %s608_s0 = int_to_ptr.vmem [resolvable:$true] %s607_s0 }
 0x29b   : > { %s605_s9 = scalar_lea.hbm %s1474_s3, %s734_s25  ;;  %s594_s18 = scalar_lea.sflag [#allocation4], %s1350_s27 }
 0x29c   : > { %s948_s24 = scalar_lea.vmem %s608_s0, 128  ;;  %p1531_p4 = scmp.ne.s32.totalorder %s1511_s10, 0 }
 0x29d   : > { %p949_p2 = scmp.ne.s32.totalorder %s608_s0, %s948_s24  ;;  %s1080_s4 = smov [#allocation8]  }
 0x29e   : > { %s952_s11 = sshll.u32 %s1080_s4, 4  ;;  %s953_s11 = int_to_ptr.vmem [resolvable:$false] %s952_s11 }
 0x29f   : > { %p950_p1 = pnand %p949_p2, %p1531_p4  ;;  %s954_s17 = scalar_lea.vmem %s953_s11, 256 }
 0x2a0   : > { %p955_p0 = scmp.lt.s32.totalorder %s608_s0, %s953_s11  ;;  %p956_p12 = scmp.lt.s32.totalorder %s954_s17, %s948_s24 }
 0x2a1   : > { %p951_p11 = pneg %p950_p1 }
 0x2a2   : > { %p957_p9 = por %p956_p12, %p955_p0 }
 0x2a4   : > { %p958_p5 = pnand %p957_p9, %p951_p11 }
 0x2a6   : > { %961 = shalt.err (!%p958_p5)
}
 0x2a7   : > { %s962_s22 = scalar_lea.hbm %s605_s9, 128  ;;  %s966_s29 = scalar_lea.hbm %s1474_s3, 512 }
 0x2a8   : > { %p963_p13 = scmp.ne.s32.totalorder %s605_s9, %s962_s22  ;;  %p967_p8 = scmp.lt.s32.totalorder %s605_s9, %s1474_s3 }
 0x2a9   : > { %p968_p3 = scmp.lt.s32.totalorder %s966_s29, %s962_s22 }
 0x2aa   : > { %p964_p6 = pnand %p963_p13, %p1531_p4 }
 0x2ab   : > { %p969_p10 = por %p968_p3, %p967_p8 }
 0x2ac   : > { %p965_p7 = pneg %p964_p6 }
 0x2ae   : > { %p970_p2 = pnand %p969_p10, %p965_p7 }
 0x2b0   : > { %973 = shalt.err (!%p970_p2)
}
 0x2b1   : > { %749 = dma.vmem_to_hbm [thread:$0]  (%p1531_p4), %s608_s0, 128, %s605_s9, %s594_s18  }
 0x2b2 PF: > { %s1532_s8 = sld [smem:[#allocation14_spill]]  ;;  %p766_p1 = scmp.ge.s32.totalorder %s1068_s21, 2 }
 0x2b3   : > { %s1533_s6 = sld [smem:[#allocation19_spill]] }
 0x2b8   : > { %s619_s23 = sand.u32 1, %s1532_s8  }
 0x2b9   : > { %p1534_p11 = scmp.ne.s32.totalorder %s1533_s6, 0  ;;  %s620_s1 = scalar_lea.sflag [#allocation4], %s619_s23 }
 0x2bb   : > { %p762_p0 = pnand %p766_p1, %p1534_p11 }
 0x2bd   : > { %p763_p12 = pneg %p762_p0 }
 0x2bf   : > { %1027 = dma.done.wait (%p763_p12), %s620_s1, 128  }
 0x2c0   : > { %1029 = vsyncadd (%p763_p12), %s620_s1, 4294967168  ;;  %s1535_s21 = sld [smem:[#allocation16_spill]]  ;;  %s1536_s26 = smov %s1315_s12 }
 0x2c1   : > { %s1537_s5 = sld [smem:[#allocation13_spill]]  ;;  %s1541_s12 = smov %s1036_s13 }
 0x2c2   : > { %s1538_s17 = sld [smem:[#allocation17_spill]]  ;;  %s1542_s13 = smov %s1040_s14 }
 0x2c3   : > { %s1539_s10 = sld [smem:[#allocation15_spill]]  ;;  %s1543_s14 = smov %s1536_s26 }
 0x2c4   : > { %s1540_s20 = sld [smem:[#allocation18_spill]]  ;;  %s1544_s15 = smov %s1048_s16 }
 0x2c5   : > { %s1546_s18 = smov %s1060_s19 }
 0x2c6   : > { %p19_p4 = scmp.ge.s32.totalorder %s1535_s21, 6  }
 0x2c7   : > { %s1545_s16 = smov %s1537_s5 }
 0x2c8   :  { %21 = sbr.rel (!%p19_p4) target bundleno = 13 (0xd), region = 109 }
 0x2c9   : > { %s1547_s19 = smov %s1539_s10 }
 0x2cd   :  { %625 = vsyncpa [#allocation3], 1 }
 0x2ce   :  { %627 = vsyncpa [#allocation3 + $0x1], 1 }
 0x2cf   :  { %628 = vsyncpa [#allocation6], 1 }
 0x2d0   :  { %630 = vsyncpa [#allocation6 + $0x1], 1 }
 0x2d1   :  { %631 = vsyncpa [#allocation4], 1 }
 0x2d2   :  { %633 = vsyncpa [#allocation4 + $0x1], 1 }

</bundles_post_ra>
